<compile_context>
chip_gen: v6e
topology: v6e:2x2x1
jax: 0.10.0
libtpu: 0.0.40
codegen_flags: <defaults>
</compile_context>

<pallas_src>
import numpy as np
import jax
import jax.numpy as jnp
from jax import lax
from jax.experimental import pallas as pl
from jax.experimental.pallas import tpu as pltpu


def cbam1d_kernel(x_ref, w1t_ref, w2t_ref, cw_ref, o_ref):
    x = x_ref[...].astype(jnp.float32)                    # (Bt, C, T)
    bt, _, t = x.shape
    k_taps = cw_ref.shape[1]
    pad = k_taps // 2

    # ---------------- channel attention ----------------
    avg_p = jnp.mean(x, axis=-1)                          # (Bt, C)  AdaptiveAvgPool1d(1)
    max_p = jnp.max(x, axis=-1)                           # (Bt, C)  AdaptiveMaxPool1d(1)
    pools = jnp.concatenate([avg_p, max_p], axis=0)       # (2*Bt, C) -- fused MLP input

    h = jnp.dot(pools, w1t_ref[...], preferred_element_type=jnp.float32)   # (2*Bt, H)
    h = jnp.maximum(h, 0.0)
    y = jnp.dot(h, w2t_ref[...], preferred_element_type=jnp.float32)       # (2*Bt, C)

    scale_ch = jax.nn.sigmoid(y[:bt] + y[bt:])            # (Bt, C)
    x_ch = x * scale_ch[:, :, None]                       # (Bt, C, T)

    # ---------------- spatial attention ----------------
    avg_sp = jnp.mean(x_ch, axis=1)                       # (Bt, T)
    max_sp = jnp.max(x_ch, axis=1)                        # (Bt, T)

    # 'same' zero-padded cross-correlation, as K shift-and-FMA taps.
    pos = lax.broadcasted_iota(jnp.int32, (bt, t), 1)     # lane positions
    conv = jnp.zeros((bt, t), jnp.float32)
    for k in range(k_taps):                               # static unroll (K=7)
        d = k - pad                                       # input offset of this tap
        w_a = cw_ref[0, k]                                # SMEM scalar reads
        w_m = cw_ref[1, k]
        if d == 0:
            a_s, m_s = avg_sp, max_sp
        else:
            s = (-d) % t                                  # result[i] = row[i + d] (mod T)
            a_s = pltpu.roll(avg_sp, s, 1)
            m_s = pltpu.roll(max_sp, s, 1)
        tap = w_a * a_s + w_m * m_s
        valid = (pos + d >= 0) & (pos + d < t)            # zero out the wrapped taps
        conv = conv + jnp.where(valid, tap, 0.0)

    scale_sp = jax.nn.sigmoid(conv)                       # (Bt, T)
    o_ref[...] = (x_ch * scale_sp[:, None, :]).astype(o_ref.dtype)


def _pick_batch_tile(b, batch_tile):
    if batch_tile is None:
        # Amortize per-step overhead but keep >= 2 grid steps when possible
        # (megacore sharding on v7x); cap the tile so VMEM stays small.
        batch_tile = max(1, min(8, b // 2)) if b >= 2 else b
    bt = max(1, min(batch_tile, b))
    while b % bt != 0:                                    # force a divisor of B
        bt -= 1
    return bt


def cbam1d_pallas(x, w1, w2, conv_w, *, batch_tile=None):
    b, c, t = x.shape
    bt = _pick_batch_tile(b, batch_tile)
    k_taps = conv_w.shape[-1]

    w1t = jnp.asarray(w1, jnp.float32).T                  # (C, H)
    w2t = jnp.asarray(w2, jnp.float32).T                  # (H, C)
    cw = jnp.asarray(conv_w, jnp.float32).reshape(2, k_taps)   # (2, K) conv taps

    return pl.pallas_call(
        cbam1d_kernel,
        out_shape=jax.ShapeDtypeStruct((b, c, t), x.dtype),
        grid_spec=pltpu.PrefetchScalarGridSpec(
            num_scalar_prefetch=0,
            grid=(b // bt,),
            in_specs=[
                pl.BlockSpec((bt, c, t), lambda i: (i, 0, 0)),      # x batch tile
                pl.BlockSpec(w1t.shape, lambda i: (0, 0)),          # fc1 weight (C, H)
                pl.BlockSpec(w2t.shape, lambda i: (0, 0)),          # fc2 weight (H, C)
                pl.BlockSpec(memory_space=pltpu.MemorySpace.SMEM),  # conv taps (2, K)
            ],
            out_specs=pl.BlockSpec((bt, c, t), lambda i: (i, 0, 0)),
        ),
        compiler_params=pltpu.CompilerParams(
            dimension_semantics=("parallel",)),
    )(x, w1t, w2t, cw)


def cbam1d_ref(x, w1, w2, conv_w):
    """Pure-JAX reference matching the PyTorch forward exactly."""
    avg = jnp.mean(x, axis=-1)                            # (B, C)
    mx = jnp.max(x, axis=-1)                              # (B, C)

    def fc(p):
        return jax.nn.relu(p @ w1.T) @ w2.T

    scale_ch = jax.nn.sigmoid(fc(avg) + fc(mx))[..., None]
    x = x * scale_ch
    avg_sp = jnp.mean(x, axis=1, keepdims=True)
    max_sp = jnp.max(x, axis=1, keepdims=True)
    cat = jnp.concatenate([avg_sp, max_sp], axis=1)       # (B, 2, T)
    pad = conv_w.shape[-1] // 2
    conv = lax.conv_general_dilated(
        cat, conv_w, window_strides=(1,), padding=[(pad, pad)],
        dimension_numbers=("NCH", "OIH", "NCH"))
    scale_sp = jax.nn.sigmoid(conv)
    return x * scale_sp


if __name__ == "__main__":
    B, C, T = 2, 32, 128
    REDUCTION, KSIZE = 16, 7
    H = C // REDUCTION

    key = jax.random.PRNGKey(0)
    kx, k1, k2, k3 = jax.random.split(key, 4)
    x = jax.random.normal(kx, (B, C, T), dtype=jnp.float32)
    # Deterministic synthetic parameters (shapes as in the module's __init__).
    w1 = jax.random.normal(k1, (H, C), dtype=jnp.float32) * 0.2        # nn.Linear(C, C//r, bias=False)
    w2 = jax.random.normal(k2, (C, H), dtype=jnp.float32) * 0.2        # nn.Linear(C//r, C, bias=False)
    conv_w = jax.random.normal(k3, (1, 2, KSIZE), dtype=jnp.float32) * 0.3  # nn.Conv1d(2,1,7,bias=False)

    out = cbam1d_pallas(x, w1, w2, conv_w)
    out = jax.block_until_ready(out)

    ref = cbam1d_ref(x, w1, w2, conv_w)
    np.testing.assert_allclose(np.asarray(out), np.asarray(ref), rtol=1e-4, atol=1e-5)

    print("KERNEL_OK")
</pallas_src>

<mosaic_0001>
module attributes {stable_mosaic.version = 11 : i64} {
  func.func @cbam1d_kernel(%arg0: i32, %arg1: memref<1x32x128xf32, #tpu.memory_space<vmem>>, %arg2: memref<32x2xf32, #tpu.memory_space<vmem>>, %arg3: memref<2x32xf32, #tpu.memory_space<vmem>>, %arg4: memref<2x7xf32, #tpu.memory_space<smem>>, %arg5: memref<1x32x128xf32, #tpu.memory_space<vmem>>) attributes {dimension_semantics = [#tpu.dimension_semantics<parallel>], iteration_bounds = array<i64: 2>, scalar_prefetch = 0 : i64, scratch_operands = 0 : i64, tpu.core_type = #tpu.core_type<tc>, window_params = [{transform_indices = @transform_0, window_bounds = array<i64: 1, 32, 128>}, {pipeline_mode = #tpu.pipeline_mode<synchronous>, transform_indices = @transform_1, window_bounds = array<i64: 32, 2>}, {pipeline_mode = #tpu.pipeline_mode<synchronous>, transform_indices = @transform_2, window_bounds = array<i64: 2, 32>}, {transform_indices = @transform_3, window_bounds = array<i64: 2, 7>}, {transform_indices = @transform_4, window_bounds = array<i64: 1, 32, 128>}]} {
    %c0 = arith.constant 0 : index
    %c0_0 = arith.constant 0 : index
    %c0_1 = arith.constant 0 : index
    %0 = vector.load %arg1[%c0, %c0_0, %c0_1] : memref<1x32x128xf32, #tpu.memory_space<vmem>>, vector<1x32x128xf32>
    %cst = arith.constant dense<0.000000e+00> : vector<1x32xf32>
    %1 = vector.multi_reduction <add>, %0, %cst [2] : vector<1x32x128xf32> to vector<1x32xf32>
    %cst_2 = arith.constant 1.280000e+02 : f32
    %2 = vector.broadcast %cst_2 : f32 to vector<1x32xf32>
    %3 = arith.divf %1, %2 : vector<1x32xf32>
    %cst_3 = arith.constant dense<0xFF800000> : vector<1x32xf32>
    %4 = vector.multi_reduction <maximumf>, %0, %cst_3 [2] : vector<1x32x128xf32> to vector<1x32xf32>
    %5 = tpu.concatenate %3, %4 in 0 : vector<1x32xf32>, vector<1x32xf32> -> vector<2x32xf32>
    %c0_4 = arith.constant 0 : index
    %c0_5 = arith.constant 0 : index
    %6 = vector.load %arg2[%c0_4, %c0_5] : memref<32x2xf32, #tpu.memory_space<vmem>>, vector<32x2xf32>
    %cst_6 = arith.constant dense<0.000000e+00> : vector<2x2xf32>
    %7 = tpu.matmul %5, %6, %cst_6 {dimension_numbers = #tpu.dot_dimension_numbers<[1], [0], [0], [1], [0, 0, 1, 1], [], []>} : vector<2x32xf32>, vector<32x2xf32>, vector<2x2xf32> -> vector<2x2xf32>
    %cst_7 = arith.constant 0.000000e+00 : f32
    %8 = vector.broadcast %cst_7 : f32 to vector<2x2xf32>
    %9 = arith.maximumf %7, %8 : vector<2x2xf32>
    %c0_8 = arith.constant 0 : index
    %c0_9 = arith.constant 0 : index
    %10 = vector.load %arg3[%c0_8, %c0_9] : memref<2x32xf32, #tpu.memory_space<vmem>>, vector<2x32xf32>
    %cst_10 = arith.constant dense<0.000000e+00> : vector<2x32xf32>
    %11 = tpu.matmul %9, %10, %cst_10 {dimension_numbers = #tpu.dot_dimension_numbers<[1], [0], [0], [1], [0, 0, 1, 1], [], []>} : vector<2x2xf32>, vector<2x32xf32>, vector<2x32xf32> -> vector<2x32xf32>
    %12 = vector.extract_strided_slice %11 {offsets = [0, 0], sizes = [1, 32], strides = [1, 1]} : vector<2x32xf32> to vector<1x32xf32>
    %13 = vector.extract_strided_slice %11 {offsets = [1, 0], sizes = [1, 32], strides = [1, 1]} : vector<2x32xf32> to vector<1x32xf32>
    %14 = arith.addf %12, %13 : vector<1x32xf32>
    %15 = arith.negf %14 : vector<1x32xf32>
    %16 = math.exp %15 : vector<1x32xf32>
    %cst_11 = arith.constant 1.000000e+00 : f32
    %17 = vector.broadcast %cst_11 : f32 to vector<1x32xf32>
    %18 = arith.addf %17, %16 : vector<1x32xf32>
    %19 = arith.divf %17, %18 : vector<1x32xf32>
    %20 = vector.shape_cast %19 : vector<1x32xf32> to vector<1x32x1xf32>
    %21 = vector.broadcast %20 : vector<1x32x1xf32> to vector<1x32x128xf32>
    %22 = arith.mulf %0, %21 : vector<1x32x128xf32>
    %cst_12 = arith.constant dense<0.000000e+00> : vector<1x128xf32>
    %23 = vector.multi_reduction <add>, %22, %cst_12 [1] : vector<1x32x128xf32> to vector<1x128xf32>
    %cst_13 = arith.constant 3.200000e+01 : f32
    %24 = vector.broadcast %cst_13 : f32 to vector<1x128xf32>
    %25 = arith.divf %23, %24 : vector<1x128xf32>
    %cst_14 = arith.constant dense<0xFF800000> : vector<1x128xf32>
    %26 = vector.multi_reduction <maximumf>, %22, %cst_14 [1] : vector<1x32x128xf32> to vector<1x128xf32>
    %27 = tpu.iota {dimensions = array<i32: 1>} : vector<1x128xi32>
    %cst_15 = arith.constant 0.000000e+00 : f32
    %28 = vector.broadcast %cst_15 : f32 to vector<1x128xf32>
    %c0_16 = arith.constant 0 : index
    %c0_17 = arith.constant 0 : index
    %29 = memref.load %arg4[%c0_16, %c0_17] : memref<2x7xf32, #tpu.memory_space<smem>>
    %c1 = arith.constant 1 : index
    %c0_18 = arith.constant 0 : index
    %30 = memref.load %arg4[%c1, %c0_18] : memref<2x7xf32, #tpu.memory_space<smem>>
    %c3_i32 = arith.constant 3 : i32
    %31 = tpu.dynamic_rotate %25 by %c3_i32 dim 1 : vector<1x128xf32>, i32 -> vector<1x128xf32>
    %c3_i32_19 = arith.constant 3 : i32
    %32 = tpu.dynamic_rotate %26 by %c3_i32_19 dim 1 : vector<1x128xf32>, i32 -> vector<1x128xf32>
    %33 = vector.broadcast %29 : f32 to vector<1x128xf32>
    %34 = arith.mulf %33, %31 : vector<1x128xf32>
    %35 = vector.broadcast %30 : f32 to vector<1x128xf32>
    %36 = arith.mulf %35, %32 : vector<1x128xf32>
    %37 = arith.addf %34, %36 : vector<1x128xf32>
    %c-3_i32 = arith.constant -3 : i32
    %38 = vector.broadcast %c-3_i32 : i32 to vector<1x128xi32>
    %39 = arith.addi %27, %38 : vector<1x128xi32>
    %c0_i32 = arith.constant 0 : i32
    %40 = vector.broadcast %c0_i32 : i32 to vector<1x128xi32>
    %41 = arith.cmpi sge, %39, %40 : vector<1x128xi32>
    %c-3_i32_20 = arith.constant -3 : i32
    %42 = vector.broadcast %c-3_i32_20 : i32 to vector<1x128xi32>
    %43 = arith.addi %27, %42 : vector<1x128xi32>
    %c128_i32 = arith.constant 128 : i32
    %44 = vector.broadcast %c128_i32 : i32 to vector<1x128xi32>
    %45 = arith.cmpi slt, %43, %44 : vector<1x128xi32>
    %46 = arith.andi %41, %45 : vector<1x128xi1>
    %cst_21 = arith.constant 0.000000e+00 : f32
    %47 = vector.broadcast %cst_21 : f32 to vector<1x128xf32>
    %48 = arith.select %46, %37, %47 : vector<1x128xi1>, vector<1x128xf32>
    %49 = arith.addf %28, %48 : vector<1x128xf32>
    %c0_22 = arith.constant 0 : index
    %c1_23 = arith.constant 1 : index
    %50 = memref.load %arg4[%c0_22, %c1_23] : memref<2x7xf32, #tpu.memory_space<smem>>
    %c1_24 = arith.constant 1 : index
    %c1_25 = arith.constant 1 : index
    %51 = memref.load %arg4[%c1_24, %c1_25] : memref<2x7xf32, #tpu.memory_space<smem>>
    %c2_i32 = arith.constant 2 : i32
    %52 = tpu.dynamic_rotate %25 by %c2_i32 dim 1 : vector<1x128xf32>, i32 -> vector<1x128xf32>
    %c2_i32_26 = arith.constant 2 : i32
    %53 = tpu.dynamic_rotate %26 by %c2_i32_26 dim 1 : vector<1x128xf32>, i32 -> vector<1x128xf32>
    %54 = vector.broadcast %50 : f32 to vector<1x128xf32>
    %55 = arith.mulf %54, %52 : vector<1x128xf32>
    %56 = vector.broadcast %51 : f32 to vector<1x128xf32>
    %57 = arith.mulf %56, %53 : vector<1x128xf32>
    %58 = arith.addf %55, %57 : vector<1x128xf32>
    %c-2_i32 = arith.constant -2 : i32
    %59 = vector.broadcast %c-2_i32 : i32 to vector<1x128xi32>
    %60 = arith.addi %27, %59 : vector<1x128xi32>
    %c0_i32_27 = arith.constant 0 : i32
    %61 = vector.broadcast %c0_i32_27 : i32 to vector<1x128xi32>
    %62 = arith.cmpi sge, %60, %61 : vector<1x128xi32>
    %c-2_i32_28 = arith.constant -2 : i32
    %63 = vector.broadcast %c-2_i32_28 : i32 to vector<1x128xi32>
    %64 = arith.addi %27, %63 : vector<1x128xi32>
    %c128_i32_29 = arith.constant 128 : i32
    %65 = vector.broadcast %c128_i32_29 : i32 to vector<1x128xi32>
    %66 = arith.cmpi slt, %64, %65 : vector<1x128xi32>
    %67 = arith.andi %62, %66 : vector<1x128xi1>
    %cst_30 = arith.constant 0.000000e+00 : f32
    %68 = vector.broadcast %cst_30 : f32 to vector<1x128xf32>
    %69 = arith.select %67, %58, %68 : vector<1x128xi1>, vector<1x128xf32>
    %70 = arith.addf %49, %69 : vector<1x128xf32>
    %c0_31 = arith.constant 0 : index
    %c2 = arith.constant 2 : index
    %71 = memref.load %arg4[%c0_31, %c2] : memref<2x7xf32, #tpu.memory_space<smem>>
    %c1_32 = arith.constant 1 : index
    %c2_33 = arith.constant 2 : index
    %72 = memref.load %arg4[%c1_32, %c2_33] : memref<2x7xf32, #tpu.memory_space<smem>>
    %c1_i32 = arith.constant 1 : i32
    %73 = tpu.dynamic_rotate %25 by %c1_i32 dim 1 : vector<1x128xf32>, i32 -> vector<1x128xf32>
    %c1_i32_34 = arith.constant 1 : i32
    %74 = tpu.dynamic_rotate %26 by %c1_i32_34 dim 1 : vector<1x128xf32>, i32 -> vector<1x128xf32>
    %75 = vector.broadcast %71 : f32 to vector<1x128xf32>
    %76 = arith.mulf %75, %73 : vector<1x128xf32>
    %77 = vector.broadcast %72 : f32 to vector<1x128xf32>
    %78 = arith.mulf %77, %74 : vector<1x128xf32>
    %79 = arith.addf %76, %78 : vector<1x128xf32>
    %c-1_i32 = arith.constant -1 : i32
    %80 = vector.broadcast %c-1_i32 : i32 to vector<1x128xi32>
    %81 = arith.addi %27, %80 : vector<1x128xi32>
    %c0_i32_35 = arith.constant 0 : i32
    %82 = vector.broadcast %c0_i32_35 : i32 to vector<1x128xi32>
    %83 = arith.cmpi sge, %81, %82 : vector<1x128xi32>
    %c-1_i32_36 = arith.constant -1 : i32
    %84 = vector.broadcast %c-1_i32_36 : i32 to vector<1x128xi32>
    %85 = arith.addi %27, %84 : vector<1x128xi32>
    %c128_i32_37 = arith.constant 128 : i32
    %86 = vector.broadcast %c128_i32_37 : i32 to vector<1x128xi32>
    %87 = arith.cmpi slt, %85, %86 : vector<1x128xi32>
    %88 = arith.andi %83, %87 : vector<1x128xi1>
    %cst_38 = arith.constant 0.000000e+00 : f32
    %89 = vector.broadcast %cst_38 : f32 to vector<1x128xf32>
    %90 = arith.select %88, %79, %89 : vector<1x128xi1>, vector<1x128xf32>
    %91 = arith.addf %70, %90 : vector<1x128xf32>
    %c0_39 = arith.constant 0 : index
    %c3 = arith.constant 3 : index
    %92 = memref.load %arg4[%c0_39, %c3] : memref<2x7xf32, #tpu.memory_space<smem>>
    %c1_40 = arith.constant 1 : index
    %c3_41 = arith.constant 3 : index
    %93 = memref.load %arg4[%c1_40, %c3_41] : memref<2x7xf32, #tpu.memory_space<smem>>
    %94 = vector.broadcast %92 : f32 to vector<1x128xf32>
    %95 = arith.mulf %94, %25 : vector<1x128xf32>
    %96 = vector.broadcast %93 : f32 to vector<1x128xf32>
    %97 = arith.mulf %96, %26 : vector<1x128xf32>
    %98 = arith.addf %95, %97 : vector<1x128xf32>
    %c0_i32_42 = arith.constant 0 : i32
    %99 = vector.broadcast %c0_i32_42 : i32 to vector<1x128xi32>
    %100 = arith.addi %27, %99 : vector<1x128xi32>
    %c0_i32_43 = arith.constant 0 : i32
    %101 = vector.broadcast %c0_i32_43 : i32 to vector<1x128xi32>
    %102 = arith.cmpi sge, %100, %101 : vector<1x128xi32>
    %c0_i32_44 = arith.constant 0 : i32
    %103 = vector.broadcast %c0_i32_44 : i32 to vector<1x128xi32>
    %104 = arith.addi %27, %103 : vector<1x128xi32>
    %c128_i32_45 = arith.constant 128 : i32
    %105 = vector.broadcast %c128_i32_45 : i32 to vector<1x128xi32>
    %106 = arith.cmpi slt, %104, %105 : vector<1x128xi32>
    %107 = arith.andi %102, %106 : vector<1x128xi1>
    %cst_46 = arith.constant 0.000000e+00 : f32
    %108 = vector.broadcast %cst_46 : f32 to vector<1x128xf32>
    %109 = arith.select %107, %98, %108 : vector<1x128xi1>, vector<1x128xf32>
    %110 = arith.addf %91, %109 : vector<1x128xf32>
    %c0_47 = arith.constant 0 : index
    %c4 = arith.constant 4 : index
    %111 = memref.load %arg4[%c0_47, %c4] : memref<2x7xf32, #tpu.memory_space<smem>>
    %c1_48 = arith.constant 1 : index
    %c4_49 = arith.constant 4 : index
    %112 = memref.load %arg4[%c1_48, %c4_49] : memref<2x7xf32, #tpu.memory_space<smem>>
    %c127_i32 = arith.constant 127 : i32
    %113 = tpu.dynamic_rotate %25 by %c127_i32 dim 1 : vector<1x128xf32>, i32 -> vector<1x128xf32>
    %c127_i32_50 = arith.constant 127 : i32
    %114 = tpu.dynamic_rotate %26 by %c127_i32_50 dim 1 : vector<1x128xf32>, i32 -> vector<1x128xf32>
    %115 = vector.broadcast %111 : f32 to vector<1x128xf32>
    %116 = arith.mulf %115, %113 : vector<1x128xf32>
    %117 = vector.broadcast %112 : f32 to vector<1x128xf32>
    %118 = arith.mulf %117, %114 : vector<1x128xf32>
    %119 = arith.addf %116, %118 : vector<1x128xf32>
    %c1_i32_51 = arith.constant 1 : i32
    %120 = vector.broadcast %c1_i32_51 : i32 to vector<1x128xi32>
    %121 = arith.addi %27, %120 : vector<1x128xi32>
    %c0_i32_52 = arith.constant 0 : i32
    %122 = vector.broadcast %c0_i32_52 : i32 to vector<1x128xi32>
    %123 = arith.cmpi sge, %121, %122 : vector<1x128xi32>
    %c1_i32_53 = arith.constant 1 : i32
    %124 = vector.broadcast %c1_i32_53 : i32 to vector<1x128xi32>
    %125 = arith.addi %27, %124 : vector<1x128xi32>
    %c128_i32_54 = arith.constant 128 : i32
    %126 = vector.broadcast %c128_i32_54 : i32 to vector<1x128xi32>
    %127 = arith.cmpi slt, %125, %126 : vector<1x128xi32>
    %128 = arith.andi %123, %127 : vector<1x128xi1>
    %cst_55 = arith.constant 0.000000e+00 : f32
    %129 = vector.broadcast %cst_55 : f32 to vector<1x128xf32>
    %130 = arith.select %128, %119, %129 : vector<1x128xi1>, vector<1x128xf32>
    %131 = arith.addf %110, %130 : vector<1x128xf32>
    %c0_56 = arith.constant 0 : index
    %c5 = arith.constant 5 : index
    %132 = memref.load %arg4[%c0_56, %c5] : memref<2x7xf32, #tpu.memory_space<smem>>
    %c1_57 = arith.constant 1 : index
    %c5_58 = arith.constant 5 : index
    %133 = memref.load %arg4[%c1_57, %c5_58] : memref<2x7xf32, #tpu.memory_space<smem>>
    %c126_i32 = arith.constant 126 : i32
    %134 = tpu.dynamic_rotate %25 by %c126_i32 dim 1 : vector<1x128xf32>, i32 -> vector<1x128xf32>
    %c126_i32_59 = arith.constant 126 : i32
    %135 = tpu.dynamic_rotate %26 by %c126_i32_59 dim 1 : vector<1x128xf32>, i32 -> vector<1x128xf32>
    %136 = vector.broadcast %132 : f32 to vector<1x128xf32>
    %137 = arith.mulf %136, %134 : vector<1x128xf32>
    %138 = vector.broadcast %133 : f32 to vector<1x128xf32>
    %139 = arith.mulf %138, %135 : vector<1x128xf32>
    %140 = arith.addf %137, %139 : vector<1x128xf32>
    %c2_i32_60 = arith.constant 2 : i32
    %141 = vector.broadcast %c2_i32_60 : i32 to vector<1x128xi32>
    %142 = arith.addi %27, %141 : vector<1x128xi32>
    %c0_i32_61 = arith.constant 0 : i32
    %143 = vector.broadcast %c0_i32_61 : i32 to vector<1x128xi32>
    %144 = arith.cmpi sge, %142, %143 : vector<1x128xi32>
    %c2_i32_62 = arith.constant 2 : i32
    %145 = vector.broadcast %c2_i32_62 : i32 to vector<1x128xi32>
    %146 = arith.addi %27, %145 : vector<1x128xi32>
    %c128_i32_63 = arith.constant 128 : i32
    %147 = vector.broadcast %c128_i32_63 : i32 to vector<1x128xi32>
    %148 = arith.cmpi slt, %146, %147 : vector<1x128xi32>
    %149 = arith.andi %144, %148 : vector<1x128xi1>
    %cst_64 = arith.constant 0.000000e+00 : f32
    %150 = vector.broadcast %cst_64 : f32 to vector<1x128xf32>
    %151 = arith.select %149, %140, %150 : vector<1x128xi1>, vector<1x128xf32>
    %152 = arith.addf %131, %151 : vector<1x128xf32>
    %c0_65 = arith.constant 0 : index
    %c6 = arith.constant 6 : index
    %153 = memref.load %arg4[%c0_65, %c6] : memref<2x7xf32, #tpu.memory_space<smem>>
    %c1_66 = arith.constant 1 : index
    %c6_67 = arith.constant 6 : index
    %154 = memref.load %arg4[%c1_66, %c6_67] : memref<2x7xf32, #tpu.memory_space<smem>>
    %c125_i32 = arith.constant 125 : i32
    %155 = tpu.dynamic_rotate %25 by %c125_i32 dim 1 : vector<1x128xf32>, i32 -> vector<1x128xf32>
    %c125_i32_68 = arith.constant 125 : i32
    %156 = tpu.dynamic_rotate %26 by %c125_i32_68 dim 1 : vector<1x128xf32>, i32 -> vector<1x128xf32>
    %157 = vector.broadcast %153 : f32 to vector<1x128xf32>
    %158 = arith.mulf %157, %155 : vector<1x128xf32>
    %159 = vector.broadcast %154 : f32 to vector<1x128xf32>
    %160 = arith.mulf %159, %156 : vector<1x128xf32>
    %161 = arith.addf %158, %160 : vector<1x128xf32>
    %c3_i32_69 = arith.constant 3 : i32
    %162 = vector.broadcast %c3_i32_69 : i32 to vector<1x128xi32>
    %163 = arith.addi %27, %162 : vector<1x128xi32>
    %c0_i32_70 = arith.constant 0 : i32
    %164 = vector.broadcast %c0_i32_70 : i32 to vector<1x128xi32>
    %165 = arith.cmpi sge, %163, %164 : vector<1x128xi32>
    %c3_i32_71 = arith.constant 3 : i32
    %166 = vector.broadcast %c3_i32_71 : i32 to vector<1x128xi32>
    %167 = arith.addi %27, %166 : vector<1x128xi32>
    %c128_i32_72 = arith.constant 128 : i32
    %168 = vector.broadcast %c128_i32_72 : i32 to vector<1x128xi32>
    %169 = arith.cmpi slt, %167, %168 : vector<1x128xi32>
    %170 = arith.andi %165, %169 : vector<1x128xi1>
    %cst_73 = arith.constant 0.000000e+00 : f32
    %171 = vector.broadcast %cst_73 : f32 to vector<1x128xf32>
    %172 = arith.select %170, %161, %171 : vector<1x128xi1>, vector<1x128xf32>
    %173 = arith.addf %152, %172 : vector<1x128xf32>
    %174 = arith.negf %173 : vector<1x128xf32>
    %175 = math.exp %174 : vector<1x128xf32>
    %cst_74 = arith.constant 1.000000e+00 : f32
    %176 = vector.broadcast %cst_74 : f32 to vector<1x128xf32>
    %177 = arith.addf %176, %175 : vector<1x128xf32>
    %178 = arith.divf %176, %177 : vector<1x128xf32>
    %179 = vector.shape_cast %178 : vector<1x128xf32> to vector<1x1x128xf32>
    %180 = vector.broadcast %179 : vector<1x1x128xf32> to vector<1x32x128xf32>
    %181 = arith.mulf %22, %180 : vector<1x32x128xf32>
    %c0_75 = arith.constant 0 : index
    %c0_76 = arith.constant 0 : index
    %c0_77 = arith.constant 0 : index
    %182 = vector.load %arg5[%c0_75, %c0_76, %c0_77] : memref<1x32x128xf32, #tpu.memory_space<vmem>>, vector<1x32x128xf32>
    tpu.vector_store %arg5[%c0_75, %c0_76, %c0_77], %181 {strides = array<i32>} : memref<1x32x128xf32, #tpu.memory_space<vmem>>, vector<1x32x128xf32>,
    return
  }
  func.func @transform_0(%arg0: i32) -> (i32, i32, i32) {
    %c0_i32 = arith.constant 0 : i32
    %c0_i32_0 = arith.constant 0 : i32
    %c0_i32_1 = arith.constant 0 : i32
    return %arg0, %c0_i32, %c0_i32_0 : i32, i32, i32
  }
  func.func @transform_1(%arg0: i32) -> (i32, i32) {
    %c0_i32 = arith.constant 0 : i32
    %c0_i32_0 = arith.constant 0 : i32
    %c0_i32_1 = arith.constant 0 : i32
    return %c0_i32, %c0_i32_0 : i32, i32
  }
  func.func @transform_2(%arg0: i32) -> (i32, i32) {
    %c0_i32 = arith.constant 0 : i32
    %c0_i32_0 = arith.constant 0 : i32
    %c0_i32_1 = arith.constant 0 : i32
    return %c0_i32, %c0_i32_0 : i32, i32
  }
  func.func @transform_3(%arg0: i32) -> (i32, i32) {
    %c0_i32 = arith.constant 0 : i32
    %c0_i32_0 = arith.constant 0 : i32
    %c0_i32_1 = arith.constant 0 : i32
    return %c0_i32, %c0_i32_0 : i32, i32
  }
  func.func @transform_4(%arg0: i32) -> (i32, i32, i32) {
    %c0_i32 = arith.constant 0 : i32
    %c0_i32_0 = arith.constant 0 : i32
    %c0_i32_1 = arith.constant 0 : i32
    return %arg0, %c0_i32, %c0_i32_0 : i32, i32, i32
  }
}

</mosaic_0001>

<bundles_post_ra>
// kernel: tpu_custom_call.1
= control target key start
LH: loop header
LB: loop body
LE: loop exit
PB: predicated region body
PF: predicated region fallthrough
CT: control target
= control target key end

     0   :  { %9 = vsyncpa [#allocation3], 0  ;;  %s1330_s0 = inlined_call_operand.hbm [shape: f32[2,32,128], index: 0, kind: input, shape index: {}]   ;;  %s1331_s1 = inlined_call_operand.vmem [shape: f32[32,2], index: 1, kind: input, shape index: {}]   ;;  %s1332_s2 = inlined_call_operand.vmem [shape: f32[2,32], index: 2, kind: input, shape index: {}]   ;;  %s1333_s3 = inlined_call_operand.vmem [shape: f32[2,7], index: 3, kind: input, shape index: {}]   ;;  %s1334_s4 = inlined_call_operand.hbm [shape: f32[2,32,128], index: 4, kind: output, shape index: {}]  }
   0x1   :  { %11 = vsyncpa [#allocation3 + $0x1], 0 }
   0x2   :  { %12 = vsyncpa [#allocation5], 0 }
   0x3   :  { %13 = vsyncpa [#allocation4], 0 }
   0x4   :  { %15 = vsyncpa [#allocation4 + $0x1], 0  ;;  %s1044_s15 = smov 0   ;;  %s1046_s16 = smov 0  }
   0x5   :  { %s1048_s17 = smov 0   ;;  %s1050_s18 = smov 0  }
   0x6 LB: > { %s1065_s19 = sadd.s32 4294967295, %s1002_s18   ;;  %s755_s20 = sadd.s32 4294967294, %s1002_s18   ;;  %s1002_s18 = sphi %s1050_s18, %s1356_s18   ;;  %s998_s17 = sphi %s1048_s17, %s1355_s17   ;;  %s994_s16 = sphi %s1046_s16, %s1354_s16   ;;  %s990_s15 = sphi %s1044_s15, %s1353_s15  }
   0x7   : > { %s1069_s21 = sadd.s32 1, %s1002_s18   ;;  %s28_s22 = sadd.s32 1, %s998_s17 }
   0x8   : > { %s25_s23 = ssub.s32 %s1002_s18, %s1069_s21  ;;  %p35_p0 = scmp.ne.s32.totalorder %s998_s17, %s994_s16 }
   0x9   : > { %p26_p1 = scmp.eq.s32.totalorder %s25_s23, 0  ;;  %p36_p2 = scmp.eq.s32.totalorder %s1002_s18, 0 }
   0xa   : > { %p41_p3 = scmp.ne.s32.totalorder %s994_s16, %s990_s15  ;;  %p1336_p4 = scmp.eq.s32.totalorder %s1065_s19, 0 }
   0xb   : > { %s1081_s24 = scalar_select %p26_p1, %s998_s17, %s28_s22  }
   0xc   : > { %p1083_p5 = por %p36_p2, %p35_p0  ;;  %p1089_p6 = por %p1336_p4, %p41_p3 }
   0xd   : > { %p128_p7 = scmp.eq.s32.totalorder %s1065_s19, 1  ;;  %p134_p8 = scmp.eq.s32.totalorder %s755_s20, 1 }
   0xe   : > { %s1340_s26 = scalar_select %p1089_p6, 1, 0 }
   0xf   : > { %p756_p9 = scmp.ge.s32.totalorder %s1002_s18, 1  ;;  %p141_p10 = scmp.lt.s32.totalorder %s1002_s18, 3 }
  0x10   : > { %p1096_p11 = por %p128_p7, %p35_p0  ;;  %p1100_p12 = por %p134_p8, %p41_p3 }
  0x11   : > { %p1104_p13 = pnand %p756_p9, %p141_p10  ;;  %s160_s6 = sshll.u32 %s1333_s3, 4  ;;  %s161_s6 = int_to_ptr.vmem [resolvable:$true] %s160_s6 }
  0x12   : > { %s1341_s27 = scalar_select %p1096_p11, 1, 0 }
  0x13   : > { %s1342_s28 = scalar_select %p1100_p12, 1, 0 }
  0x14   : > { %s1343_s29 = scalar_select %p1104_p13, 1, 0 }
  0x15   : > { %p822_p1 = pneg %p1104_p13  ;;  %p835_p2 = scmp.lt.s32.totalorder %s1002_s18, 2 }
  0x16   : > { %s171_s8 = sand.u32 1, %s998_s17   ;;  %s891_s11 = scalar_lea.vmem %s161_s6, 32 }
  0x17   : > { %p1117_p7 = pnand %p822_p1, %p1336_p4  ;;  %p1124_p3 = pnand %p835_p2, %p1083_p5 }
  0x18   : > { %s759_s10 = sshll.u32 %s171_s8, 5  ;;  %p892_p8 = scmp.ne.s32.totalorder %s161_s6, %s891_s11 }
  0x19   : > { %p893_p9 = pneg %p1117_p7  ;;  %p899_p12 = scmp.lt.s32.totalorder %s161_s6, %s161_s6 }
  0x1a   : > { %p900_p11 = scmp.lt.s32.totalorder %s891_s11, %s891_s11 }
  0x1b   : > { %p894_p10 = pnand %p893_p9, %p892_p8 }
  0x1c   : > { %p901_p1 = por %p900_p11, %p899_p12 }
  0x1d   : > { %p895_p0 = pneg %p894_p10 }
  0x1f   : > { %p902_p4 = pnand %p901_p1, %p895_p0 }
  0x21   : > { %905 = shalt.err (!%p902_p4)
}
  0x22   : > { %s1004_s12 = smov [#allocation6]   ;;  %s789_s13 = sshll.u32 %s1002_s18, 9 }
  0x23   : > { %825 = dma.vmem_to_smem (!%p1117_p7), %s161_s6, 32, %s1004_s12, [#allocation5]  }
  0x24   : > { %s175_s14 = scalar_lea.vmem [#allocation2], %s759_s10  ;;  %s1136_s25 = scalar_lea.hbm %s1330_s0, %s789_s13 }
  0x25   : > { %s182_s20 = sshll.u32 %s175_s14, 4  ;;  %s1140_s30 = scalar_lea.sflag [#allocation3], %s171_s8  ;;  %s1138_s20 = int_to_ptr.vmem [resolvable:$true] %s182_s20 }
  0x26   : > { %s906_s5 = scalar_lea.hbm %s1136_s25, 512  ;;  %p908_p5 = pneg %p1124_p3 }
  0x27   : > { %p907_p4 = scmp.ne.s32.totalorder %s1136_s25, %s906_s5  ;;  %s911_s10 = scalar_lea.hbm %s1330_s0, 1024 }
  0x28   : > { %p912_p0 = scmp.lt.s32.totalorder %s1136_s25, %s1330_s0  ;;  %p913_p2 = scmp.lt.s32.totalorder %s911_s10, %s906_s5 }
  0x29   : > { %p909_p11 = pnand %p908_p5, %p907_p4 }
  0x2a   : > { %p914_p7 = por %p913_p2, %p912_p0 }
  0x2b   : > { %p910_p12 = pneg %p909_p11 }
  0x2d   : > { %p915_p8 = pnand %p914_p7, %p910_p12 }
  0x2f   : > { %918 = shalt.err (!%p915_p8)
}
  0x30   : > { %s919_s8 = scalar_lea.vmem %s1138_s20, 512  ;;  %s1005_s13 = smov [#allocation2]  }
  0x31   : > { %p920_p9 = scmp.ne.s32.totalorder %s1138_s20, %s919_s8  ;;  %s924_s14 = sshll.u32 %s1005_s13, 4  ;;  %s925_s14 = int_to_ptr.vmem [resolvable:$false] %s924_s14 }
  0x32   : > { %s926_s22 = scalar_lea.vmem %s925_s14, 1024  ;;  %p927_p4 = scmp.lt.s32.totalorder %s1138_s20, %s925_s14 }
  0x33   : > { %p922_p10 = pnand %p920_p9, %p908_p5  ;;  %p928_p11 = scmp.lt.s32.totalorder %s926_s22, %s919_s8 }
  0x35   : > { %p923_p1 = pneg %p922_p10  ;;  %p929_p6 = por %p928_p11, %p927_p4 }
  0x37   : > { %p930_p13 = pnand %p929_p6, %p923_p1 }
  0x39   : > { %933 = shalt.err (!%p930_p13)
}
  0x3a   : > { %s1006_s23 = smov 128   ;;  %s1007_s5 = smov 8  }
  0x3b   : > { %829 = dma.hbm_to_vmem [thread:$0]  (!%p1124_p3), %s1136_s25, 512, %s1138_s20, %s1140_s30, %s1006_s23, %s1006_s23, %s1007_s5  }
  0x3c   : > { %p1346_p5 = scmp.ne.s32.totalorder %s1343_s29, 0 }
  0x3d   : > { %s1164_s6 = sand.u32 (!%p1346_p5), 1, %s994_s16   ;;  %p1347_p6 = scmp.ne.s32.totalorder (!%p1346_p5), %s1340_s26, 0 }
  0x3e   : > { %194 = sbr.rel (%p1346_p5) target bundleno = 990 (0x3de), region = 36  ;;  %s763_s7 = sshll.u32 (!%p1346_p5), %s1164_s6, 5 }
  0x3f   : > { %s197_s10 = scalar_lea.sflag (!%p1346_p5), [#allocation3], %s1164_s6  ;;  %s200_s11 = scalar_lea.vmem (!%p1346_p5), [#allocation2], %s763_s7 }
  0x43   : > { %977 = dma.done.wait (%p1347_p6), %s197_s10, 512  }
  0x44   : > { %979 = vsyncadd (%p1347_p6), %s197_s10, 4294966784  ;;  %p1348_p13 = scmp.eq.s32.totalorder %s1065_s19, 0 }
  0x46   : > { %981 = dma.done.wait (%p1348_p13), [#allocation5], 32   ;;  %p1349_p3 = pmov %p1348_p13 }
  0x48   : > { %983 = vsyncadd (%p1349_p3), [#allocation5], 4294967264 }
  0x49   : > { %209 = sfence }
  0x4a   : > { %v1178_v0 = vld [vmem:[%s200_s11 + $0x10] sm:$0xff]  ;;  %v1180_v1 = vld [vmem:[%s200_s11] sm:$0xff]  ;;  %v1184_v2 = vld [vmem:[%s200_s11 + $0x18] sm:$0xff]  ;;  %v1008_v4 = vmov 0.0   ;;  %vm1009_vm0 = vmmov 0   ;;  %v259_v9 = vlaneseq  ;;  %vm270_vm1 = vcmask 130112  }
  0x4b   : > { %238 = vadd.xlane.f32.xlu1 %v1178_v0  ;;  %234 = vadd.xlane.f32.xlu0 %v1180_v1  ;;  %v1186_v3 = vld [vmem:[%s200_s11 + $0x8] sm:$0xff]  ;;  %v316_v5 = vld [vmem:[%s1331_s1 + $0x18] sm:$0xff]  ;;  %v315_v6 = vld [vmem:[%s1331_s1 + $0x10] sm:$0xff]  ;;  %vm277_vm2 = vcmask 195712   ;;  %vm284_vm3 = vcmask 261312   ;;  %vm311_vm4 = vcmask 1040384  }
  0x4c   : > { %798 = vmatprep.subr.mxu0 %v1008_v4  ;;  %809 = vmatprep.subr.mxu1 %v1008_v4  ;;  %v314_v7 = vld [vmem:[%s1331_s1 + $0x8] sm:$0xff]  ;;  %v313_v8 = vld [vmem:[%s1331_s1] sm:$0xff]  ;;  %v1206_v10 = vand.u32 127, %v259_v9  ;;  %v1209_v12 = vshrl.u32 %v259_v9, 7  ;;  %vm317_vm5 = vcmask 261120   ;;  %vm397_vm6 = vcmask 1041408  }
  0x4d   : > { %799 = vmatpush3.msra.mxu0 %v316_v5  ;;  %806 = vmatprep.mubr.msk.f32.mxu0 %vm1009_vm0, %v1008_v4  ;;  %v392_v46 = vld [vmem:[%s1332_s2] sm:$0x3]  ;;  %vm393_vm7 = vcmask 15360   ;;  %s775_s22 = sld [smem:[#allocation6 + $0x3]]  ;;  %s1010_s5 = smov 3  }
  0x4e   : > { %800 = vmatprep.subr.mxu0 %v1008_v4  ;;  %811 = vmatprep.mubr.msk.f32.mxu1 %vm1009_vm0, %v1008_v4  ;;  %v265_v11 = vadd.s32 4294967288, %v1206_v10  ;;  %v272_v15 = vadd.s32 4294967280, %v1206_v10  ;;  %v263_v17 = vsub.s32 %v1206_v10, %v1209_v12  ;;  %v279_v19 = vadd.s32 4294967272, %v1206_v10  ;;  %s776_s23 = sld [smem:[#allocation6 + $0x83]]  ;;  %s1011_s10 = smov 2  }
  0x4f   : > { %240 = vadd.xlane.f32.xlu1 %v1184_v2  ;;  %236 = vadd.xlane.f32.xlu0 %v1186_v3  ;;  %v483_v57 = vsub.s32 0, %v1209_v12  ;;  %s1012_s11 = smov 1   ;;  %s1013_s26 = smov 127  }
  0x50   : > { %801 = vmatpush3.msra.mxu0 %v315_v6  ;;  %v268_v16 = vsub.s32 %v265_v11, %v1209_v12  ;;  %v275_v23 = vsub.s32 %v272_v15, %v1209_v12  ;;  %v282_v27 = vsub.s32 %v279_v19, %v1209_v12  ;;  %810 = vmatpush3.msk.msra.mxu1 %vm397_vm6, %v392_v46  ;;  %s1014_s29 = smov 126   ;;  %s1015_s9 = smov 125   ;;  %v569_v46 = vadd.s32 4294967295, %v1206_v10 }
  0x51   : > { %802 = vmatprep.subr.mxu0 %v1008_v4  ;;  %s770_s20 = sld [smem:[#allocation6 + $0x80]]  ;;  %p1350_p0 = scmp.ne.s32.totalorder %s1341_s27, 0 }
  0x52   : > { %803 = vmatpush3.msra.mxu0 %v314_v7  ;;  %s524_s25 = sld [smem:[#allocation6]]  ;;  %vm570_vm10 = vcmp.ge.s32.totalorder %v569_v46, 0 }
  0x53   : > { %249 = vmax.xlane.f32.xlu1 %v1186_v3  ;;  %247 = vmax.xlane.f32.xlu0 %v1180_v1  ;;  %s772_s30 = sld [smem:[#allocation6 + $0x81]] }
  0x54   : > { %804 = vmatprep.subr.mxu0 %v1008_v4  ;;  %s771_s12 = sld [smem:[#allocation6 + $0x1]] }
  0x55   : > { %805 = vmatpush3.msra.mxu0 %v313_v8  ;;  %s774_s8 = sld [smem:[#allocation6 + $0x82]] }
  0x56   : > { %s773_s13 = sld [smem:[#allocation6 + $0x2]] }
  0x57   : > { %251 = vmax.xlane.f32.xlu0 %v1178_v0  ;;  %253 = vmax.xlane.f32.xlu1 %v1184_v2  ;;  %s1248_s14 = sld [smem:[#allocation6 + $0x84]] }
  0xd4   : > { %v239_v13 = vpop.xlane.xlu1 %238  ;;  %v235_v14 = vpop.xlane.xlu0 %234 }
  0xd5   : > { %v243_v18 = vmul.f32 0.0078125, %v235_v14  ;;  %v245_v24 = vmul.f32 0.0078125, %v239_v13 }
  0xd7   : > { %v264_v26 = vrot.slane %v243_v18, %v263_v17  ;;  %v276_v34 = vrot.slane %v245_v24, %v275_v23  ;;  %v579_v24 = vstv %s776_s23  ;;  %s1254_s23 = sld [smem:[#allocation6 + $0x85]] }
  0xd8   : > { %v241_v20 = vpop.xlane.xlu1 %240  ;;  %v237_v21 = vpop.xlane.xlu0 %236 }
  0xd9   : > { %v244_v22 = vmul.f32 0.0078125, %v237_v21  ;;  %v246_v28 = vmul.f32 0.0078125, %v241_v20 }
  0xdb   : > { %v269_v25 = vrot.slane %v244_v22, %v268_v16  ;;  %v283_v35 = vrot.slane %v246_v28, %v282_v27 }
  0xdc   : > { %v250_v29 = vpop.xlane.xlu1 %249  ;;  %v248_v30 = vpop.xlane.xlu0 %247 }
  0xdd   : > { %v271_v31 = vsel %vm270_vm1, %v269_v25, %v264_v26  ;;  %v298_v32 = vrot.slane %v250_v29, %v268_v16  ;;  %v294_v33 = vrot.slane %v248_v30, %v263_v17  ;;  %v532_v30 = vstv %s770_s20 }
  0xde   : > { %v278_v40 = vsel %vm277_vm2, %v276_v34, %v271_v31  ;;  %v549_v34 = vstv %s772_s30 }
  0xdf   : > { %v299_v41 = vsel %vm270_vm1, %v298_v32, %v294_v33  ;;  %v285_v44 = vsel %vm284_vm3, %v283_v35, %v278_v40  ;;  %v530_v32 = vstv %s524_s25  ;;  %v547_v35 = vstv %s771_s12  ;;  %s1016_s12 = smov [#allocation7]  }
  0xe0   : > { %v252_v36 = vpop.xlane.xlu0 %251  ;;  %v254_v37 = vpop.xlane.xlu1 %253 }
  0xe1   : > { %v303_v38 = vrot.slane %v252_v36, %v275_v23  ;;  %v308_v39 = vrot.slane %v254_v37, %v282_v27  ;;  %v577_v23 = vstv %s775_s22  ;;  %v552_v36 = vadd.s32 4294967294, %v1206_v10  ;;  %s1251_s22 = sld [smem:[#allocation6 + $0x4]] }
  0xe3   : > { %v304_v42 = vsel %vm277_vm2, %v303_v38, %v299_v41  ;;  %vm553_vm8 = vcmp.ge.s32.totalorder %v552_v36, 0 }
  0xe4   : > { %v309_v43 = vsel %vm284_vm3, %v308_v39, %v304_v42  ;;  %v535_v39 = vadd.s32 4294967293, %v1206_v10 }
  0xe5   : > { %v312_v45 = vsel %vm311_vm4, %v285_v44, %v309_v43  ;;  %v566_v44 = vstv %s774_s8  ;;  %s938_s8 = sshll.u32 %s1016_s12, 4  ;;  %s939_s8 = int_to_ptr.vmem [resolvable:$false] %s938_s8 }
  0xe6   : > { %807 = vmatmul.mubr.msk.f32.vlgmr.msra.gmra.mxu0 %vm317_vm5, %v312_v45  ;;  %v564_v45 = vstv %s773_s13  ;;  %vm536_vm9 = vcmp.ge.s32.totalorder %v535_v39, 0  ;;  %s940_s13 = scalar_lea.vmem %s939_s8, 1024 }
 0x1a6   : > { %v387_v47 = vpop.f32.mrf.mxu0 }
 0x1a7   : > { %v391_v48 = vmax.f32 %v387_v47, 0.0 }
 0x1a8   : > { %v808_v49 = vpop.f32.mrf.mxu0 }
 0x1a9   : > { %812 = vmatmul.mubr.msk.f32.vlgmr.msra.gmra.mxu1 %vm393_vm7, %v391_v48 }
 0x269   : > { %v467_v50 = vpop.f32.mrf.mxu1 }
 0x26a   : > { %v472_v51 = vrot.slane %v467_v50, 1 }
 0x26b   : > { %v813_v52 = vpop.f32.mrf.mxu1 }
 0x26c   : > { %v474_v53 = vadd.f32 %v472_v51, %v467_v50 }
 0x26e   : > { %v769_v54 = vmul.f32 -1.442695, %v474_v53 }
 0x270   : > { %883 = vpow2.f32 %v769_v54  ;;  %v595_v54 = vstv %s1248_s14 }
 0x27d   : > { %v884_v55 = vpop.eup %883 }
 0x27e   : > { %v478_v56 = vadd.f32 1.0, %v884_v55  ;;  %v593_v55 = vstv %s1251_s22 }
 0x280   : > { %885 = vrcp.f32 %v478_v56 }
 0x28d   : > { %v886_v58 = vpop.eup %885 }
 0x28e   : > { %v484_v59 = vrot.slane %v886_v58, %v483_v57 }
 0x290   : > { %490 = vbcast.lane.b32.xlu1 %v484_v59, 264  ;;  %486 = vbcast.lane.b32.xlu0 %v484_v59, 256 }
 0x294   : > { %494 = vbcast.lane.b32.xlu1 %v484_v59, 272 }
 0x298   : > { %498 = vbcast.lane.b32.xlu1 %v484_v59, 280 }
 0x302   : > { %v491_v60 = vpop.permute.xlu1 %490  ;;  %v487_v61 = vpop.permute.xlu0 %486 }
 0x303   : > { %v1227_v62 = vmul.f32 %v491_v60, %v1186_v3  ;;  %v1230_v63 = vmul.f32 %v487_v61, %v1180_v1  ;;  %v598_v61 = vadd.s32 1, %v1206_v10 }
 0x305   : > { %v504_v6 = vadd.f32 %v1227_v62, %v1230_v63  ;;  %v515_v3 = vmax.f32 %v1230_v63, %v1227_v62  ;;  %vm600_vm11 = vcmp.lt.s32.totalorder %v598_v61, 128 }
 0x306   : > { %v495_v4 = vpop.permute.xlu1 %494 }
 0x307   : > { %v1233_v5 = vmul.f32 %v495_v4, %v1178_v0 }
 0x309   : > { %v505_v8 = vadd.f32 %v504_v6, %v1233_v5 }
 0x30a   : > { %v499_v7 = vpop.permute.xlu1 %498 }
 0x30b   : > { %v1239_v9 = vmul.f32 %v499_v7, %v1184_v2 }
 0x30d   : > { %v506_v11 = vadd.f32 %v505_v8, %v1239_v9  ;;  %v516_v1 = vmax.f32 %v1233_v5, %v1239_v9 }
 0x30f   : > { %v507_v13 = vrot.slane %v506_v11, 4  ;;  %v517_v0 = vmax.f32 %v515_v3, %v516_v1  ;;  %v615_v3 = vadd.s32 2, %v1206_v10  ;;  %v612_v1 = vstv %s1254_s23 }
 0x311   : > { %v508_v14 = vadd.f32 %v507_v13, %v506_v11  ;;  %v518_v15 = vrot.slane %v517_v0, 4  ;;  %vm617_vm12 = vcmp.lt.s32.totalorder %v615_v3, 128 }
 0x313   : > { %v509_v16 = vrot.slane %v508_v14, 2  ;;  %v519_v17 = vmax.f32 %v517_v0, %v518_v15 }
 0x315   : > { %v510_v18 = vadd.f32 %v509_v16, %v508_v14  ;;  %v520_v19 = vrot.slane %v519_v17, 2 }
 0x317   : > { %v511_v2 = vrot.slane %v510_v18, 1  ;;  %v521_v20 = vmax.f32 %v519_v17, %v520_v19 }
 0x319   : > { %v512_v21 = vadd.f32 %v511_v2, %v510_v18  ;;  %v522_v22 = vrot.slane %v521_v20, 1 }
 0x31b   : > { %v514_v25 = vmul.f32 0.03125, %v512_v21  ;;  %v523_v26 = vmax.f32 %v521_v20, %v522_v22  ;;  %v632_v20 = vadd.s32 3, %v1206_v10 }
 0x31d   : > { %528 = vrot.lane.b32.xlu1 %v523_v26, %s1010_s5  ;;  %526 = vrot.lane.b32.xlu0 %v514_v25, %s1010_s5  ;;  %v580_v27 = vmul.f32 %v579_v24, %v523_v26  ;;  %v578_v28 = vmul.f32 %v577_v23, %v514_v25  ;;  %s1257_s5 = sld [smem:[#allocation6 + $0x5]]  ;;  %vm634_vm13 = vcmp.lt.s32.totalorder %v632_v20, 128 }
 0x31f   : > { %v1246_v29 = vadd.f32 %v580_v27, %v578_v28 }
 0x321   : > { %545 = vrot.lane.b32.xlu1 %v523_v26, %s1011_s10  ;;  %543 = vrot.lane.b32.xlu0 %v514_v25, %s1011_s10  ;;  %s1259_s10 = sld [smem:[#allocation6 + $0x86]] }
 0x323   : > { %v610_v13 = vstv %s1257_s5 }
 0x325   : > { %562 = vrot.lane.b32.xlu1 %v523_v26, %s1012_s11  ;;  %560 = vrot.lane.b32.xlu0 %v514_v25, %s1012_s11  ;;  %s1263_s11 = sld [smem:[#allocation6 + $0x6]] }
 0x327   : > { %v629_v19 = vstv %s1259_s10 }
 0x329   : > { %591 = vrot.lane.b32.xlu1 %v523_v26, %s1013_s26  ;;  %589 = vrot.lane.b32.xlu0 %v514_v25, %s1013_s26  ;;  %s790_s26 = sshll.u32 %s1065_s19, 9  ;;  %s657_s19 = scalar_lea.sflag [#allocation4], %s1164_s6 }
 0x32a   : > { %s1281_s30 = scalar_lea.hbm %s1334_s4, %s790_s26 }
 0x32b   : > { %v627_v2 = vstv %s1263_s11 }
 0x32d   : > { %608 = vrot.lane.b32.xlu1 %v523_v26, %s1014_s29  ;;  %606 = vrot.lane.b32.xlu0 %v514_v25, %s1014_s29  ;;  %s229_s29 = scalar_lea.vmem [#allocation7], %s763_s7 }
 0x331   : > { %625 = vrot.lane.b32.xlu1 %v523_v26, %s1015_s9  ;;  %623 = vrot.lane.b32.xlu0 %v514_v25, %s1015_s9  ;;  %s670_s9 = sshll.u32 %s229_s29, 4  ;;  %s1283_s9 = int_to_ptr.vmem [resolvable:$true] %s670_s9 }
 0x332   : > { %s934_s7 = scalar_lea.vmem %s1283_s9, 512  ;;  %p941_p8 = scmp.lt.s32.totalorder %s1283_s9, %s939_s8 }
 0x333   : > { %p935_p12 = scmp.ne.s32.totalorder %s1283_s9, %s934_s7  ;;  %p942_p9 = scmp.lt.s32.totalorder %s940_s13, %s934_s7 }
 0x335   : > { %p936_p2 = pnand %p935_p12, %p1350_p0  ;;  %p943_p10 = por %p942_p9, %p941_p8 }
 0x337   : > { %p937_p7 = pneg %p936_p2 }
 0x339   : > { %p944_p1 = pnand %p943_p10, %p937_p7 }
 0x38f   : > { %v529_v31 = vpop.permute.xlu1 %528  ;;  %v527_v33 = vpop.permute.xlu0 %526 }
 0x390   : > { %v533_v37 = vmul.f32 %v532_v30, %v529_v31  ;;  %v531_v38 = vmul.f32 %v530_v32, %v527_v33 }
 0x392   : > { %v534_v47 = vadd.f32 %v533_v37, %v531_v38 }
 0x393   : > { %v546_v40 = vpop.permute.xlu1 %545  ;;  %v544_v41 = vpop.permute.xlu0 %543 }
 0x394   : > { %v550_v42 = vmul.f32 %v549_v34, %v546_v40  ;;  %v548_v43 = vmul.f32 %v547_v35, %v544_v41  ;;  %v539_v56 = vsel %vm536_vm9, %v534_v47, 0.0 }
 0x396   : > { %v551_v48 = vadd.f32 %v550_v42, %v548_v43 }
 0x397   : > { %v563_v49 = vpop.permute.xlu1 %562  ;;  %v561_v50 = vpop.permute.xlu0 %560 }
 0x398   : > { %v556_v51 = vsel %vm553_vm8, %v551_v48, 0.0  ;;  %v567_v52 = vmul.f32 %v566_v44, %v563_v49  ;;  %v565_v53 = vmul.f32 %v564_v45, %v561_v50 }
 0x399   : > { %v557_v59 = vadd.f32 %v556_v51, %v539_v56 }
 0x39a   : > { %v568_v58 = vadd.f32 %v567_v52, %v565_v53 }
 0x39b   : > { %v592_v60 = vpop.permute.xlu1 %591  ;;  %v590_v4 = vpop.permute.xlu0 %589 }
 0x39c   : > { %v573_v6 = vsel %vm570_vm10, %v568_v58, 0.0  ;;  %v596_v7 = vmul.f32 %v595_v54, %v592_v60  ;;  %v594_v8 = vmul.f32 %v593_v55, %v590_v4 }
 0x39d   : > { %v574_v11 = vadd.f32 %v573_v6, %v557_v59 }
 0x39e   : > { %v597_v0 = vadd.f32 %v596_v7, %v594_v8 }
 0x39f   : > { %v609_v14 = vpop.permute.xlu1 %608  ;;  %v607_v15 = vpop.permute.xlu0 %606  ;;  %v586_v18 = vadd.f32 %v1246_v29, %v574_v11 }
 0x3a0   : > { %v613_v16 = vmul.f32 %v612_v1, %v609_v14  ;;  %v611_v17 = vmul.f32 %v610_v13, %v607_v15  ;;  %v602_v21 = vsel %vm600_vm11, %v597_v0, 0.0 }
 0x3a1   : > { %v603_v28 = vadd.f32 %v602_v21, %v586_v18 }
 0x3a2   : > { %v614_v22 = vadd.f32 %v613_v16, %v611_v17 }
 0x3a3   : > { %v626_v23 = vpop.permute.xlu1 %625  ;;  %v624_v24 = vpop.permute.xlu0 %623 }
 0x3a4   : > { %v619_v25 = vsel %vm617_vm12, %v614_v22, 0.0  ;;  %v630_v26 = vmul.f32 %v629_v19, %v626_v23  ;;  %v628_v27 = vmul.f32 %v627_v2, %v624_v24 }
 0x3a5   : > { %v620_v31 = vadd.f32 %v619_v25, %v603_v28 }
 0x3a6   : > { %v631_v30 = vadd.f32 %v630_v26, %v628_v27 }
 0x3a8   : > { %v636_v32 = vsel %vm634_vm13, %v631_v30, 0.0 }
 0x3a9   : > { %v637_v33 = vadd.f32 %v636_v32, %v620_v31 }
 0x3ab   : > { %v783_v29 = vmul.f32 -1.442695, %v637_v33 }
 0x3ad   : > { %887 = vpow2.f32 %v783_v29 }
 0x3ba   : > { %v888_v34 = vpop.eup %887 }
 0x3bb   : > { %v641_v35 = vadd.f32 1.0, %v888_v34 }
 0x3bd   : > { %889 = vrcp.f32 %v641_v35 }
 0x3ca   : > { %v890_v10 = vpop.eup %889 }
 0x3cb   : > { %v647_v36 = vrot.slane %v890_v10, %v483_v57 }
 0x3cd   : > { %v648_v37 = vmul.f32 %v647_v36, %v1230_v63  ;;  %v649_v38 = vmul.f32 %v647_v36, %v1227_v62  ;;  %v650_v39 = vmul.f32 %v647_v36, %v1233_v5  ;;  %v651_v40 = vmul.f32 %v647_v36, %v1239_v9 }
 0x3cf   : > { %652 = vst [vmem:[%s229_s29] sm:$0xff] %v648_v37  ;;  %653 = vst [vmem:[%s229_s29 + $0x8] sm:$0xff] %v649_v38 }
 0x3d0   : > { %654 = vst [vmem:[%s229_s29 + $0x10] sm:$0xff] %v650_v39  ;;  %655 = vst [vmem:[%s229_s29 + $0x18] sm:$0xff] %v651_v40 }
 0x3d1   : > { %947 = shalt.err (!%p944_p1)
}
 0x3d2   : > { %s948_s14 = scalar_lea.hbm %s1281_s30, 512  ;;  %s952_s5 = scalar_lea.hbm %s1334_s4, 1024 }
 0x3d3   : > { %p949_p4 = scmp.ne.s32.totalorder %s1281_s30, %s948_s14  ;;  %p953_p6 = scmp.lt.s32.totalorder %s1281_s30, %s1334_s4 }
 0x3d4   : > { %p954_p13 = scmp.lt.s32.totalorder %s952_s5, %s948_s14 }
 0x3d5   : > { %p950_p11 = pnand %p949_p4, %p1350_p0 }
 0x3d6   : > { %p955_p3 = por %p954_p13, %p953_p6 }
 0x3d7   : > { %p951_p5 = pneg %p950_p11 }
 0x3d9   : > { %p956_p12 = pnand %p955_p3, %p951_p5 }
 0x3db   : > { %959 = shalt.err (!%p956_p12)
}
 0x3dc   : > { %s1017_s26 = smov 128   ;;  %s1018_s29 = smov 8  }
 0x3dd   : > { %820 = dma.vmem_to_hbm [thread:$0]  (%p1350_p0), %s1283_s9, 512, %s1281_s30, %s657_s19, %s1017_s26, %s1017_s26, %s1018_s29  }
 0x3de PF: > { %s685_s20 = sand.u32 1, %s990_s15   ;;  %p1351_p2 = scmp.ne.s32.totalorder %s1342_s28, 0 }
 0x3df   : > { %p1352_p7 = scmp.ge.s32.totalorder %s1002_s18, 2  ;;  %s686_s25 = scalar_lea.sflag [#allocation4], %s685_s20 }
 0x3e1   : > { %p831_p8 = pnand %p1352_p7, %p1351_p2 }
 0x3e3   : > { %p832_p9 = pneg %p831_p8 }
 0x3e5   : > { %985 = dma.done.wait (%p832_p9), %s686_s25, 512  }
 0x3e6   : > { %987 = vsyncadd (%p832_p9), %s686_s25, 4294966784  ;;  %p18_p10 = scmp.ge.s32.totalorder %s1069_s21, 4   ;;  %s1353_s15 = smov %s994_s16 }
 0x3e7   : > { %s1354_s16 = smov %s998_s17  ;;  %s1355_s17 = smov %s1081_s24 }
 0x3e8   : > { %s1356_s18 = smov %s1069_s21  ;;  %20 = sbr.rel (!%p18_p10) target bundleno = 6 (0x6), region = 86 }
 0x3ed   :  { %691 = vsyncpa [#allocation3], 1 }
 0x3ee   :  { %693 = vsyncpa [#allocation3 + $0x1], 1 }
 0x3ef   :  { %694 = vsyncpa [#allocation4], 1 }
 0x3f0   :  { %696 = vsyncpa [#allocation4 + $0x1], 1 }
 0x3f1   :  { %697 = vsyncpa [#allocation5], 1 }
 0x3f2   :  { %699 = vsyncpa [#allocation5 + $0x1], 1 }

</bundles_post_ra>
